<compile_context>
chip_gen: v6e
topology: v6e:2x2x1
jax: 0.10.0
libtpu: 0.0.40
codegen_flags: <defaults>
</compile_context>

<pallas_src>
import functools

import jax
import jax.numpy as jnp
from jax.experimental import pallas as pl
from jax.experimental.pallas import tpu as pltpu


# ---------------- tile / VMEM helpers ----------------

def _vmem_capacity_bytes():
    try:
        info = pltpu.get_tpu_info()
        cap = getattr(info, "vmem_capacity_bytes", None)
        if cap:
            return int(cap)
    except Exception:
        pass
    return 64 << 20  # conservative fallback: v7x per-TensorCore VMEM


def _pick_channel_tile(dim, cap, align):
    """Largest exact divisor of `dim` that is a multiple of `align` and <= cap.
    Falls back to the full dim (channel counts are modest, so this is memory-safe)."""
    if dim <= cap:
        return dim
    t = (cap // align) * align
    while t >= align:
        if dim % t == 0:
            return t
        t -= align
    return dim


def _pick_spatial_tile(hw, target_lanes, budget_bytes, bytes_per_lane):
    """Lane (spatial) tile: a multiple of 128, capped by the lane target and the VMEM budget.
    Never falls back to the raw (unaligned) full dimension; ragged tails are masked in-kernel
    (pass 1) and clipped by Pallas on writeback (pass 2)."""
    hw_pad = pl.cdiv(hw, 128) * 128
    cap = min(int(target_lanes), budget_bytes // max(bytes_per_lane, 1))
    cap = max(128, (cap // 128) * 128)
    return min(hw_pad, cap)


def _vmem_limit(need_bytes, vmem_cap):
    # at least the (raised) scoped default, at most ~80% of physical VMEM
    return int(min(int(0.8 * vmem_cap), max(32 << 20, need_bytes + (8 << 20))))


# ---------------- pass 1: global max pool over the lane-dense spatial axis ----------------

def _pool_kernel(x_ref, o_ref, acc_ref, *, hw, ts, neg):
    # x_ref : (1, tc, ts)  input tile, spatial on the 128-lane axis
    # o_ref : (1, tc, 1)   pooled per-channel max (f32), written once on the last spatial step
    # acc   : (tc, ts)     full-width running max in the input dtype (pure VPU per step)
    s = pl.program_id(2)
    x = x_ref[0]
    if hw % ts != 0:  # static: only pay the mask when the spatial axis is ragged
        lane = jax.lax.broadcasted_iota(jnp.int32, x.shape, 1)
        x = jnp.where(s * ts + lane < hw, x, neg)

    @pl.when(s == 0)
    def _():
        acc_ref[...] = x

    @pl.when(s > 0)
    def _():
        acc_ref[...] = jnp.maximum(acc_ref[...], x)

    @pl.when(s == pl.num_programs(2) - 1)
    def _():
        o_ref[...] = jnp.max(acc_ref[...], axis=-1, keepdims=True)[None].astype(o_ref.dtype)


# ---------------- pass 2: pure lane-dense broadcast-store ----------------

def _bcast_kernel(y_ref, o_ref):
    # y_ref : (1, tco, 1)   post-ReLU channel values, already in the output dtype
    # o_ref : (1, tco, ts)  lane-dense output tile -> splat + full-width vst only
    o_ref[...] = jnp.broadcast_to(y_ref[...], o_ref.shape)


# ---------------- wrapper ----------------

def image_pool_1(x, conv_w, bn_gamma, bn_beta, bn_mean, bn_var, eps=1e-5,
                 target_spatial_lanes=8192, max_channel_tile=256):
    """x: (N, Cin, H, W); conv_w: (Cout, Cin, 1, 1); BN params: (Cout,)."""
    n, cin, h, w = x.shape
    cout = conv_w.shape[0]
    hw = h * w
    out_dtype = x.dtype
    in_itemsize = jnp.dtype(x.dtype).itemsize
    out_itemsize = jnp.dtype(out_dtype).itemsize

    # Lane-dense layout: contiguous (N, C, H, W) -> (N, C, H*W) is a free metadata reshape.
    x3 = x.reshape(n, cin, hw)

    vmem_cap = _vmem_capacity_bytes()
    budget = min(vmem_cap // 2, 48 << 20)  # budget for block buffers (double-buffered)

    # Channel tiles aligned to the dtype's sublane packing (8 f32 / 16 bf16 / 32 int8).
    c_align = max(8, 32 // in_itemsize)
    co_align = max(8, 32 // out_itemsize)
    tc = _pick_channel_tile(cin, max_channel_tile, c_align)
    tco = _pick_channel_tile(cout, max_channel_tile, co_align)

    # Spatial tiles: pass 1 pays 2x input double-buffer + 1x full-width scratch per lane,
    # pass 2 pays 2x output double-buffer per lane.
    ts1 = _pick_spatial_tile(hw, target_spatial_lanes, budget, 3 * tc * in_itemsize)
    ts2 = _pick_spatial_tile(hw, target_spatial_lanes, budget, 2 * tco * out_itemsize)
    n_s1 = pl.cdiv(hw, ts1)
    n_s2 = pl.cdiv(hw, ts2)

    if jnp.issubdtype(x.dtype, jnp.floating):
        neg = float("-inf")
    else:
        neg = int(jnp.iinfo(x.dtype).min)

    # ---- pass 1: global max pool -> pooled (N, Cin, 1) f32 ----
    p1_need = 3 * tc * ts1 * in_itemsize + 4 * tc * 128
    pooled = pl.pallas_call(
        functools.partial(_pool_kernel, hw=hw, ts=ts1, neg=neg),
        out_shape=jax.ShapeDtypeStruct((n, cin, 1), jnp.float32),
        grid=(n, cin // tc, n_s1),
        in_specs=[pl.BlockSpec((1, tc, ts1), lambda i, c, s: (i, c, s))],
        out_specs=pl.BlockSpec((1, tc, 1), lambda i, c, s: (i, c, 0)),
        scratch_shapes=[pltpu.VMEM((tc, ts1), x.dtype)],
        compiler_params=pltpu.CompilerParams(
            dimension_semantics=("parallel", "parallel", "arbitrary"),
            vmem_limit_bytes=_vmem_limit(p1_need, vmem_cap)),
        cost_estimate=pl.CostEstimate(
            flops=int(n * cin * hw),
            transcendentals=0,
            bytes_accessed=int(n * cin * hw * in_itemsize + n * cin * 4)),
    )(x3)

    # ---- 1x1 conv (BN folded, running stats) + ReLU, hoisted to plain XLA ----
    w2 = conv_w.reshape(cout, cin).astype(jnp.float32)
    inv_std = jax.lax.rsqrt(bn_var.astype(jnp.float32) + eps)
    scale = bn_gamma.astype(jnp.float32) * inv_std                              # (Cout,)
    w_fold = w2 * scale[:, None]                                                # (Cout, Cin)
    bias = bn_beta.astype(jnp.float32) - bn_mean.astype(jnp.float32) * scale    # (Cout,)
    y = jnp.maximum(pooled[..., 0] @ w_fold.T + bias, 0.0)                      # (N, Cout) f32
    y3 = y.astype(out_dtype).reshape(n, cout, 1)  # cast ONCE, outside the broadcast hot loop

    # ---- pass 2: broadcast-store (N, Cout, 1) -> (N, Cout, HW) ----
    p2_need = 2 * tco * ts2 * out_itemsize + 4 * tco * 128
    out3 = pl.pallas_call(
        _bcast_kernel,
        out_shape=jax.ShapeDtypeStruct((n, cout, hw), out_dtype),
        grid=(n, cout // tco, n_s2),
        in_specs=[pl.BlockSpec((1, tco, 1), lambda i, co, s: (i, co, 0))],
        out_specs=pl.BlockSpec((1, tco, ts2), lambda i, co, s: (i, co, s)),
        compiler_params=pltpu.CompilerParams(
            # no cross-step carry -> all axes parallel; v7x megacore shards the spatial axis
            dimension_semantics=("parallel", "parallel", "parallel"),
            vmem_limit_bytes=_vmem_limit(p2_need, vmem_cap)),
        cost_estimate=pl.CostEstimate(
            flops=int(n * cout * hw),
            transcendentals=0,
            bytes_accessed=int(n * cout * hw * out_itemsize + n * cout * out_itemsize)),
    )(y3)

    return out3.reshape(n, cout, h, w)


# ---------------- reference & demo ----------------

def _reference(x, conv_w, bn_gamma, bn_beta, bn_mean, bn_var, eps=1e-5):
    n, cin, h, w = x.shape
    cout = conv_w.shape[0]
    pooled = jnp.max(x, axis=(2, 3))                       # (N, Cin)
    y = pooled @ conv_w.reshape(cout, cin).T               # (N, Cout)
    y = (y - bn_mean) / jnp.sqrt(bn_var + eps) * bn_gamma + bn_beta
    y = jnp.maximum(y, 0.0)
    return jnp.broadcast_to(y[:, :, None, None], (n, cout, h, w))


if __name__ == "__main__":
    key = jax.random.PRNGKey(0)
    k_x, k_w, k_g, k_b, k_m, k_v, k_x2, k_w2 = jax.random.split(key, 8)

    # ---- case 1: divisible shapes; tile caps lowered to exercise multi-tile grids ----
    N, Cin, H, W, Cout = 2, 16, 16, 16, 8
    x = jax.random.normal(k_x, (N, Cin, H, W), dtype=jnp.float32)
    conv_w = jax.random.normal(k_w, (Cout, Cin, 1, 1), dtype=jnp.float32) * 0.1
    bn_gamma = 1.0 + 0.1 * jax.random.normal(k_g, (Cout,), dtype=jnp.float32)
    bn_beta = 0.1 * jax.random.normal(k_b, (Cout,), dtype=jnp.float32)
    bn_mean = 0.05 * jax.random.normal(k_m, (Cout,), dtype=jnp.float32)
    bn_var = 0.5 + jnp.abs(jax.random.normal(k_v, (Cout,), dtype=jnp.float32))

    out = image_pool_1(x, conv_w, bn_gamma, bn_beta, bn_mean, bn_var,
                       target_spatial_lanes=128, max_channel_tile=8)
    out = jax.block_until_ready(out)
    ref = _reference(x, conv_w, bn_gamma, bn_beta, bn_mean, bn_var)
    assert out.shape == (N, Cout, H, W)
    assert jnp.allclose(out, ref, atol=1e-5, rtol=1e-5), "mismatch vs reference (divisible)"

    # ---- case 2: ragged spatial size (H*W not a multiple of 128) -> mask + clipped writeback ----
    N2, Cin2, H2, W2, Cout2 = 1, 8, 10, 10, 8
    x2 = jax.random.normal(k_x2, (N2, Cin2, H2, W2), dtype=jnp.float32)
    conv_w2 = jax.random.normal(k_w2, (Cout2, Cin2, 1, 1), dtype=jnp.float32) * 0.1
    out2 = image_pool_1(x2, conv_w2, bn_gamma, bn_beta, bn_mean, bn_var)
    out2 = jax.block_until_ready(out2)
    ref2 = _reference(x2, conv_w2, bn_gamma, bn_beta, bn_mean, bn_var)
    assert out2.shape == (N2, Cout2, H2, W2)
    assert jnp.allclose(out2, ref2, atol=1e-5, rtol=1e-5), "mismatch vs reference (ragged)"

    print("KERNEL_OK")
</pallas_src>

<mosaic_0001>
module attributes {stable_mosaic.version = 11 : i64} {
  func.func @_pool_kernel(%arg0: i32, %arg1: i32, %arg2: i32, %arg3: memref<1x8x128xf32, #tpu.memory_space<vmem>>, %arg4: memref<1x8x1xf32, #tpu.memory_space<vmem>>, %arg5: memref<8x128xf32, #tpu.memory_space<vmem>>) attributes {dimension_semantics = [#tpu.dimension_semantics<parallel>, #tpu.dimension_semantics<parallel>, #tpu.dimension_semantics<arbitrary>], iteration_bounds = array<i64: 2, 2, 2>, scalar_prefetch = 0 : i64, scratch_operands = 1 : i64, tpu.core_type = #tpu.core_type<tc>, window_params = [{transform_indices = @transform_0, window_bounds = array<i64: 1, 8, 128>}, {transform_indices = @transform_1, window_bounds = array<i64: 1, 8, 1>}]} {
    %c0 = arith.constant 0 : index
    %c0_0 = arith.constant 0 : index
    %c0_1 = arith.constant 0 : index
    %0 = vector.load %arg3[%c0, %c0_0, %c0_1] : memref<1x8x128xf32, #tpu.memory_space<vmem>>, vector<1x8x128xf32>
    %1 = vector.shape_cast %0 : vector<1x8x128xf32> to vector<8x128xf32>
    %c0_i32 = arith.constant 0 : i32
    %2 = arith.cmpi eq, %arg2, %c0_i32 : i32
    %3 = arith.extui %2 : i1 to i32
    %c0_i32_2 = arith.constant 0 : i32
    %4 = arith.cmpi ne, %3, %c0_i32_2 : i32
    scf.if %4 {
      %c0_6 = arith.constant 0 : index
      %c0_7 = arith.constant 0 : index
      %11 = vector.load %arg5[%c0_6, %c0_7] : memref<8x128xf32, #tpu.memory_space<vmem>>, vector<8x128xf32>
      tpu.vector_store %arg5[%c0_6, %c0_7], %1 {strides = array<i32>} : memref<8x128xf32, #tpu.memory_space<vmem>>, vector<8x128xf32>,
    } else {
    }
    %c0_i32_3 = arith.constant 0 : i32
    %5 = arith.cmpi sgt, %arg2, %c0_i32_3 : i32
    %6 = arith.extui %5 : i1 to i32
    %c0_i32_4 = arith.constant 0 : i32
    %7 = arith.cmpi ne, %6, %c0_i32_4 : i32
    scf.if %7 {
      %c0_6 = arith.constant 0 : index
      %c0_7 = arith.constant 0 : index
      %11 = vector.load %arg5[%c0_6, %c0_7] : memref<8x128xf32, #tpu.memory_space<vmem>>, vector<8x128xf32>
      %12 = arith.maximumf %11, %1 : vector<8x128xf32>
      %c0_8 = arith.constant 0 : index
      %c0_9 = arith.constant 0 : index
      %13 = vector.load %arg5[%c0_8, %c0_9] : memref<8x128xf32, #tpu.memory_space<vmem>>, vector<8x128xf32>
      tpu.vector_store %arg5[%c0_8, %c0_9], %12 {strides = array<i32>} : memref<8x128xf32, #tpu.memory_space<vmem>>, vector<8x128xf32>,
    } else {
    }
    %c1_i32 = arith.constant 1 : i32
    %8 = arith.cmpi eq, %arg2, %c1_i32 : i32
    %9 = arith.extui %8 : i1 to i32
    %c0_i32_5 = arith.constant 0 : i32
    %10 = arith.cmpi ne, %9, %c0_i32_5 : i32
    scf.if %10 {
      %c0_6 = arith.constant 0 : index
      %c0_7 = arith.constant 0 : index
      %11 = vector.load %arg5[%c0_6, %c0_7] : memref<8x128xf32, #tpu.memory_space<vmem>>, vector<8x128xf32>
      %cst = arith.constant dense<0xFF800000> : vector<8xf32>
      %12 = vector.multi_reduction <maximumf>, %11, %cst [1] : vector<8x128xf32> to vector<8xf32>
      %13 = vector.shape_cast %12 : vector<8xf32> to vector<8x1xf32>
      %14 = vector.shape_cast %13 : vector<8x1xf32> to vector<1x8x1xf32>
      %c0_8 = arith.constant 0 : index
      %c0_9 = arith.constant 0 : index
      %c0_10 = arith.constant 0 : index
      %15 = vector.load %arg4[%c0_8, %c0_9, %c0_10] : memref<1x8x1xf32, #tpu.memory_space<vmem>>, vector<1x8x1xf32>
      tpu.vector_store %arg4[%c0_8, %c0_9, %c0_10], %14 {strides = array<i32>} : memref<1x8x1xf32, #tpu.memory_space<vmem>>, vector<1x8x1xf32>,
    } else {
    }
    return
  }
  func.func @transform_0(%arg0: i32, %arg1: i32, %arg2: i32) -> (i32, i32, i32) {
    %c0_i32 = arith.constant 0 : i32
    return %arg0, %arg1, %arg2 : i32, i32, i32
  }
  func.func @transform_1(%arg0: i32, %arg1: i32, %arg2: i32) -> (i32, i32, i32) {
    %c0_i32 = arith.constant 0 : i32
    %c0_i32_0 = arith.constant 0 : i32
    return %arg0, %arg1, %c0_i32 : i32, i32, i32
  }
}

</mosaic_0001>

<bundles_post_ra>
// kernel: tpu_custom_call.1
= control target key start
LH: loop header
LB: loop body
LE: loop exit
PB: predicated region body
PF: predicated region fallthrough
CT: control target
= control target key end

     0   :  { %6 = vsyncpa [#allocation4], 0  ;;  %s673_s0 = inlined_call_operand.hbm [shape: f32[2,16,256], index: 0, kind: input, shape index: {}]   ;;  %s674_s1 = inlined_call_operand.vmem [shape: f32[2,16,1], index: 1, kind: output, shape index: {}]  }
   0x1   :  { %8 = vsyncpa [#allocation4 + $0x1], 0  ;;  %s520_s6 = smov 0   ;;  %s522_s7 = smov 0  }
   0x2   :  { %s524_s8 = smov 0   ;;  %s526_s9 = smov 0  }
   0x3   :  { %s528_s10 = smov 0   ;;  %s530_s11 = smov 0  }
   0x4   :  { %s532_s12 = smov 0   ;;  %s534_s13 = smov 0  }
   0x5   :  { %s536_s14 = smov 0   ;;  %s538_s15 = smov 0  }
   0x6 LB: > { %s293_s16 = sadd.s32 4294967295, %s507_s15   ;;  %s26_s17 = sadd.s32 1, %s495_s12  ;;  %s507_s15 = sphi %s538_s15, %s14_s15   ;;  %s503_s14 = sphi %s536_s14, %s696_s14   ;;  %s499_s13 = sphi %s534_s13, %s695_s13   ;;  %s495_s12 = sphi %s532_s12, %s694_s12   ;;  %s491_s11 = sphi %s530_s11, %s693_s11   ;;  %s487_s10 = sphi %s528_s10, %s692_s10   ;;  %s483_s9 = sphi %s526_s9, %s691_s9   ;;  %s479_s8 = sphi %s524_s8, %s690_s8   ;;  %s475_s7 = sphi %s522_s7, %s689_s7   ;;  %s471_s6 = sphi %s520_s6, %s688_s6  }
   0x7   : > { %p27_p0 = scmp.ge.s32.totalorder %s26_s17, 2  ;;  %s29_s18 = sadd.s32 1, %s499_s13 }
   0x8   : > { %s33_s19 = sadd.s32 1, %s503_s14  ;;  %s44_s20 = sadd.s32 1, %s479_s8 }
   0x9   : > { %s698_s17 = smov (%p27_p0, %s26_s17), 0  ;;  %s700_s18 = smov (!%p27_p0, %s29_s18), %s499_s13 }
   0xa   : > { %678 = sst [smem:[#allocation6_spill]] %s698_s17  ;;  %s40_s21 = ssub.s32 %s495_s12, %s698_s17 }
   0xb   : > { %p51_p1 = scmp.ne.s32.totalorder %s479_s8, %s475_s7  ;;  %p31_p2 = scmp.ge.s32.totalorder %s700_s18, 2 }
   0xc   : > { %p52_p3 = scmp.eq.s32.totalorder %s507_s15, 0  ;;  %p57_p4 = scmp.ne.s32.totalorder %s475_s7, %s471_s6 }
   0xd   : > { %p58_p5 = scmp.eq.s32.totalorder %s293_s16, 0  ;;  %s702_s18 = smov (%p31_p2, %s700_s18), 0 }
   0xe   : > { %679 = sst [smem:[#allocation7_spill]] %s702_s18  ;;  %s704_s19 = smov (!%p31_p2, %s33_s19), %s503_s14 }
   0xf   : > { %s38_s22 = ssub.s32 %s499_s13, %s702_s18  ;;  %p587_p6 = por %p52_p3, %p51_p1 }
  0x10   : > { %p35_p7 = scmp.ge.s32.totalorder %s704_s19, 2  ;;  %p591_p8 = por %p58_p5, %p57_p4 }
  0x11   : > { %p316_p9 = scmp.lt.s32.totalorder %s507_s15, 8  ;;  %s109_s25 = sand.u32 1, %s479_s8  }
  0x12   : > { %s706_s19 = smov (%p35_p7, %s704_s19), 0  ;;  %s298_s26 = sshll.u32 %s499_s13, 1 }
  0x13   : > { %682 = sst [smem:[#allocation8_spill]] %s706_s19  ;;  %s37_s27 = ssub.s32 %s503_s14, %s706_s19 }
  0x14   : > { %s39_s28 = sor.u32 %s38_s22, %s37_s27  ;;  %s297_s29 = sshll.u32 %s109_s25, 3 }
  0x15   : > { %s41_s30 = sor.u32 %s40_s21, %s39_s28  ;;  %s118_s2 = sadd.s32 %s495_s12, %s298_s26 }
  0x16   : > { %p42_p10 = scmp.eq.s32.totalorder %s41_s30, 0  ;;  %s299_s3 = sshll.u32 %s503_s14, 2 }
  0x17   : > { %s113_s4 = scalar_lea.vmem [#allocation3], %s297_s29  ;;  %s120_s16 = sadd.s32 %s299_s3, %s118_s2 }
  0x18   : > { %s124_s5 = sshll.u32 %s113_s4, 4  ;;  %s300_s18 = sshll.u32 %s120_s16, 7  ;;  %s125_s5 = int_to_ptr.vmem [resolvable:$true] %s124_s5 }
  0x19   : > { %s605_s6 = scalar_select %p42_p10, %s479_s8, %s44_s20  }
  0x1a   : > { %p611_p11 = pnand %p316_p9, %p587_p6  ;;  %s122_s21 = scalar_lea.hbm %s673_s0, %s300_s18 }
  0x1b   : > { %p301_p12 = scmp.ge.s32.totalorder %s507_s15, 1  ;;  %p129_p13 = scmp.lt.s32.totalorder %s507_s15, 9 }
  0x1c   : > { %s110_s26 = scalar_lea.sflag [#allocation4], %s109_s25  ;;  %p399_p0 = pneg %p611_p11 }
  0x1d   : > { %s410_s20 = scalar_lea.vmem %s125_s5, 128  ;;  %s509_s23 = smov [#allocation3]  }
  0x1e   : > { %p411_p1 = scmp.ne.s32.totalorder %s125_s5, %s410_s20  ;;  %s415_s27 = sshll.u32 %s509_s23, 4  ;;  %s416_s27 = int_to_ptr.vmem [resolvable:$false] %s415_s27 }
  0x1f   : > { %s417_s28 = scalar_lea.vmem %s416_s27, 256  ;;  %p418_p4 = scmp.lt.s32.totalorder %s125_s5, %s416_s27 }
  0x20   : > { %p413_p2 = pnand %p411_p1, %p399_p0  ;;  %p419_p5 = scmp.lt.s32.totalorder %s417_s28, %s410_s20 }
  0x22   : > { %p414_p3 = pneg %p413_p2  ;;  %p420_p6 = por %p419_p5, %p418_p4 }
  0x24   : > { %p421_p7 = pnand %p420_p6, %p414_p3 }
  0x26   : > { %424 = shalt.err (!%p421_p7)
}
  0x27   : > { %315 = dma.hbm_to_vmem [thread:$0]  (!%p611_p11), %s122_s21, 128, %s125_s5, %s110_s26  }
  0x28   : > { %p130_p9 = pnand %p301_p12, %p129_p13 }
  0x29   : > { %s135_s18 = sand.u32 (!%p130_p9), 1, %s475_s7  }
  0x2a   : > { %133 = sbr.rel (%p130_p9) target bundleno = 215 (0xd7), region = 24  ;;  %s302_s19 = sshll.u32 (!%p130_p9), %s135_s18, 3 }
  0x2b   : > { %s136_s25 = scalar_lea.sflag (!%p130_p9), [#allocation4], %s135_s18  ;;  %s139_s29 = scalar_lea.vmem (!%p130_p9), [#allocation3], %s302_s19 }
  0x2f   : > { %466 = dma.done.wait (%p591_p8), %s136_s25, 128  }
  0x30   : > { %468 = vsyncadd (%p591_p8), %s136_s25, 4294967168  ;;  %p161_p10 = scmp.lt.s32.totalorder %s491_s11, 1  ;;  %p163_p11 = scmp.lt.s32.totalorder %s487_s10, 1  ;;  %v169_v0 = vld [vmem:[%s139_s29] sm:$0xff] }
  0x31   : > { %p305_p12 = scmp.ne.s32.totalorder %s483_s9, 0 }
  0x32   : > { %s708_s11 = smov (!%p161_p10, %s491_s11), 1  ;;  %s710_s10 = smov (!%p163_p11, %s487_s10), 1 }
  0x33   : > { %s303_s17 = sshll.u32 %s708_s11, 1  ;;  %173 = sbr.rel (%p305_p12) target bundleno = 57 (0x39), region = 32 }
  0x34   : > { %s166_s30 = sadd.s32 %s303_s17, %s710_s10 }
  0x35   : > { %s304_s2 = sshll.u32 %s166_s30, 3 }
  0x36   : > { %s168_s5 = scalar_lea.vmem %s674_s1, %s304_s2 }
  0x38   : > { %174 = vst [vmem:[#allocation2] sm:$0xff] %v169_v0 }
  0x39 PF: > { %p306_p8 = scmp.le.s32.totalorder %s483_s9, 0 }
  0x3b   : > { %178 = sbr.rel (%p306_p8) target bundleno = 68 (0x44), region = 36 }
  0x40   : > { %v179_v1 = vld [vmem:[#allocation2] sm:$0xff] }
  0x41   : > { %v180_v2 = vmax.f32 %v179_v1, %v169_v0 }
  0x43   : > { %181 = vst [vmem:[#allocation2] sm:$0xff] %v180_v2 }
  0x44 PF: > { %p307_p13 = scmp.ne.s32.totalorder %s483_s9, 1 }
  0x46   : > { %185 = sbr.rel (%p307_p13) target bundleno = 215 (0xd7), region = 40 }
  0x4b   : > { %v186_v3 = vld [vmem:[#allocation2] sm:$0xff]  ;;  %vm189_vm0 = vcmask 7168  }
  0x4c   : > { %187 = vmax.xlane.f32.xlu0 %v186_v3 }
  0xd5   : > { %v188_v4 = vpop.xlane.xlu0 %187 }
  0xd6   : > { %190 = vst.msk [vmem:[%s168_s5] sm:$0xff] %vm189_vm0, %v188_v4 }
  0xd7 PF: > { %s14_s15 = sadd.s32 1, %s507_s15   ;;  %s684_s10 = smov %s605_s6 }
  0xd8   : > { %p11_p0 = scmp.ge.s32.totalorder %s14_s15, 10   ;;  %s685_s24 = sld [smem:[#allocation6_spill]] }
  0xd9   : > { %s686_s16 = sld [smem:[#allocation7_spill]]  ;;  %s688_s6 = smov %s475_s7 }
  0xda   : > { %s687_s22 = sld [smem:[#allocation8_spill]]  ;;  %s689_s7 = smov %s479_s8 }
  0xdb   : > { %s690_s8 = smov %s684_s10  ;;  %s691_s9 = smov %s495_s12 }
  0xdc   : > { %s692_s10 = smov %s499_s13  ;;  %s693_s11 = smov %s503_s14 }
  0xdd   :  { %13 = sbr.rel (!%p11_p0) target bundleno = 6 (0x6), region = 76 }
  0xde   : > { %s694_s12 = smov %s685_s24 }
  0xdf   : > { %s695_s13 = smov %s686_s16 }
  0xe0   : > { %s696_s14 = smov %s687_s22 }
  0xe2   :  { %218 = vsyncpa [#allocation4], 1 }
  0xe3   :  { %220 = vsyncpa [#allocation4 + $0x1], 1 }

</bundles_post_ra>
